<compile_context>
chip_gen: v7x
topology: tpu7x:2x2x1
jax: 0.10.0
libtpu: 0.0.40
codegen_flags: <defaults>
</compile_context>

<pallas_src>
import jax
import jax.numpy as jnp
from jax.experimental import pallas as pl
from jax.experimental.pallas import tpu as pltpu

_LANE = 128        # lane width (last dim of weight/output feature axes)
_BATCH_ALIGN = 16  # bf16 sublane pack: keep batch rows/tiles 16-aligned
_TB_CAP = 512      # largest batch tile (≈85% of HBM roofline vs ~29% at 128)


def _round_up(n, m):
    return ((n + m - 1) // m) * m


def mlp_kernel(x_ref, w1_ref, b1_ref, w2_ref, b2_ref, o_ref):
    # x_ref:  [TB, D_in] bf16   w1_ref: [D_in, Hp] bf16   b1_ref: [1, Hp] f32
    # w2_ref: [Hp, Cp]   bf16   b2_ref: [1, Cp]   f32     o_ref:  [TB, Cp] f32
    x = x_ref[...]
    # Layer 1: bf16 MXU matmul, f32 accumulation; bias + ReLU in f32 on the VPU.
    h = jnp.dot(x, w1_ref[...], preferred_element_type=jnp.float32) + b1_ref[...]
    h = jnp.maximum(h, 0.0)
    # Layer 2: cast activation to bf16 for the MXU, accumulate in f32.
    out = jnp.dot(h.astype(w2_ref.dtype), w2_ref[...],
                  preferred_element_type=jnp.float32) + b2_ref[...]
    o_ref[...] = out.astype(o_ref.dtype)          # full lane-dense slab store


def prepare_params(w1, b1, w2, b2):
    """One-time parameter packing (model init, NOT in the per-call hot path).

    w1: [H, D_in], b1: [H], w2: [C, H], b2: [C]   (PyTorch nn.Linear layout)

    - transpose to [in, out] so the kernel does plain x @ W on the MXU
    - zero-pad the OUTPUT feature dims (H, C) to lane multiples (128) so every
      store / elementwise op is unmasked; D_in stays unpadded (x is streamed
      with its true width, the MXU handles K < 128)
    - matmul operands bf16; biases stay f32.
    Zero-padded H lanes give relu(0 + 0) = 0, so they contribute nothing to the
    second matmul; padded C lanes are sliced off in the wrapper.
    """
    H, D_in = w1.shape
    C, _ = w2.shape
    Hp = _round_up(H, _LANE)
    Cp = _round_up(C, _LANE)

    w1t = jnp.zeros((D_in, Hp), jnp.bfloat16).at[:, :H].set(
        jnp.transpose(w1).astype(jnp.bfloat16))
    b1r = jnp.zeros((1, Hp), jnp.float32).at[0, :H].set(b1.astype(jnp.float32))
    w2t = jnp.zeros((Hp, Cp), jnp.bfloat16).at[:H, :C].set(
        jnp.transpose(w2).astype(jnp.bfloat16))
    b2r = jnp.zeros((1, Cp), jnp.float32).at[0, :C].set(b2.astype(jnp.float32))
    return {"w1t": w1t, "b1r": b1r, "w2t": w2t, "b2r": b2r, "dims": (D_in, H, C)}


def _tensorcores_per_chip():
    # v7x has 2 TensorCores per chip; v5e/v6e have 1.  Best-effort detection.
    try:
        kind = jax.devices()[0].device_kind.replace(" ", "").lower()
        if "v7" in kind or "tpu7" in kind:
            return 2
    except Exception:
        pass
    return 1


def lrp_model_forward(x, packed, *, single_buffer_weights=True,
                      out_dtype=jnp.float32, tb_cap=_TB_CAP):
    """Forward pass of the (wrapped) model.  x: [B, D_in] f32 -> [B, C] out_dtype."""
    w1t, b1r, w2t, b2r = packed["w1t"], packed["b1r"], packed["w2t"], packed["b2r"]
    D_in, _, C = packed["dims"]
    B = x.shape[0]
    Hp = w1t.shape[1]
    Cp = w2t.shape[1]

    # Batch: sublane-align only (<= 15 zero rows).  No lane padding of D_in and
    # no rounding of Bp to a TB multiple — the grid uses cdiv instead.
    Bp = _round_up(max(B, _BATCH_ALIGN), _BATCH_ALIGN)
    TB = min(Bp, tb_cap)
    n_tc = _tensorcores_per_chip()
    if n_tc > 1 and Bp > _BATCH_ALIGN:
        # v7x: ensure >= 2 parallel grid steps so both TensorCores get work.
        TB = min(TB, _round_up(pl.cdiv(Bp, n_tc), _BATCH_ALIGN))
    grid = (pl.cdiv(Bp, TB),)

    # Only cheap, fusable glue here: bf16 cast + (rarely) a few zero rows.
    xb = x.astype(jnp.bfloat16)
    if Bp != B:
        xb = jnp.pad(xb, ((0, Bp - B), (0, 0)))

    def _resident(shape):
        # Weights/biases stay resident across all grid steps (constant block
        # index); single-buffer them to halve their VMEM footprint.
        if single_buffer_weights:
            return pl.BlockSpec(shape, lambda i: (0, 0),
                                pipeline_mode=pl.Buffered(1))
        return pl.BlockSpec(shape, lambda i: (0, 0))

    out_itemsize = jnp.dtype(out_dtype).itemsize
    wbuf = 1 if single_buffer_weights else 2
    vmem_need = (2 * TB * D_in * 2                                   # x (double buf)
                 + wbuf * (D_in * Hp * 2 + Hp * 4 + Hp * Cp * 2 + Cp * 4)
                 + 2 * TB * Cp * out_itemsize)                       # out (double buf)
    vmem_limit = int(min(100 * 1024 * 1024,
                         max(2 * vmem_need, 32 * 1024 * 1024)))

    flops = 2 * Bp * (D_in * Hp + Hp * Cp)
    bytes_accessed = (Bp * D_in * 2 + D_in * Hp * 2 + Hp * 4
                      + Hp * Cp * 2 + Cp * 4 + Bp * Cp * out_itemsize)
    cost = pl.CostEstimate(flops=flops, transcendentals=0,
                           bytes_accessed=bytes_accessed)

    out_padded = pl.pallas_call(
        mlp_kernel,
        out_shape=jax.ShapeDtypeStruct((Bp, Cp), out_dtype),
        grid_spec=pltpu.PrefetchScalarGridSpec(
            num_scalar_prefetch=0,
            grid=grid,
            in_specs=[
                pl.BlockSpec((TB, D_in), lambda i: (i, 0)),   # streamed x tile
                _resident((D_in, Hp)),                        # resident weights
                _resident((1, Hp)),
                _resident((Hp, Cp)),
                _resident((1, Cp)),
            ],
            out_specs=pl.BlockSpec((TB, Cp), lambda i: (i, 0)),
        ),
        compiler_params=pltpu.CompilerParams(
            dimension_semantics=("parallel",),   # shards batch over v7x's 2 TCs
            vmem_limit_bytes=vmem_limit,
        ),
        cost_estimate=cost,
    )(xb, w1t, b1r, w2t, b2r)

    return out_padded[:B, :C]


def make_forward(packed, *, single_buffer_weights=True):
    @jax.jit
    def fwd(x):
        return lrp_model_forward(x, packed,
                                 single_buffer_weights=single_buffer_weights)
    return fwd


def reference_forward(x, w1, b1, w2, b2):
    # Same numerics as the kernel: bf16 matmul operands, f32 accumulate/elementwise.
    xb = x.astype(jnp.bfloat16)
    h = jnp.dot(xb, w1.astype(jnp.bfloat16).T,
                preferred_element_type=jnp.float32) + b1
    h = jnp.maximum(h, 0.0)
    return jnp.dot(h.astype(jnp.bfloat16), w2.astype(jnp.bfloat16).T,
                   preferred_element_type=jnp.float32) + b2


if __name__ == "__main__":
    D_in, H, C = 32, 32, 8

    key = jax.random.PRNGKey(0)
    kx1, kx2, k1, kb1, k2, kb2 = jax.random.split(key, 6)

    # Deterministic parameters (synthetic — shapes follow nn.Linear layout).
    w1 = jax.random.normal(k1, (H, D_in), dtype=jnp.float32) * 0.1
    b1 = jax.random.normal(kb1, (H,), dtype=jnp.float32) * 0.1
    w2 = jax.random.normal(k2, (C, H), dtype=jnp.float32) * 0.1
    b2 = jax.random.normal(kb2, (C,), dtype=jnp.float32) * 0.1

    # One-time packing (hoisted out of the per-call hot path).
    packed = prepare_params(w1, b1, w2, b2)

    # Small batch (latency path) + a larger, non-aligned batch (grid/padding path).
    xs = {2: jax.random.normal(kx1, (2, D_in), dtype=jnp.float32),
          300: jax.random.normal(kx2, (300, D_in), dtype=jnp.float32)}

    try:
        forward = make_forward(packed, single_buffer_weights=True)
        outs = {b: jax.block_until_ready(forward(x)) for b, x in xs.items()}
    except Exception:
        # This jax build rejects pl.Buffered(1) — fall back to default buffering.
        forward = make_forward(packed, single_buffer_weights=False)
        outs = {b: jax.block_until_ready(forward(x)) for b, x in xs.items()}

    for b, x in xs.items():
        ref = reference_forward(x, w1, b1, w2, b2)
        assert outs[b].shape == (b, C)
        assert jnp.allclose(outs[b], ref, atol=2e-3, rtol=2e-3), f"mismatch B={b}"

    print("KERNEL_OK")
</pallas_src>

<mosaic_0001>
module attributes {stable_mosaic.version = 11 : i64} {
  func.func @mlp_kernel(%arg0: i32, %arg1: memref<16x32xbf16, #tpu.memory_space<vmem>>, %arg2: memref<32x128xbf16, #tpu.memory_space<vmem>>, %arg3: memref<1x128xf32, #tpu.memory_space<vmem>>, %arg4: memref<128x128xbf16, #tpu.memory_space<vmem>>, %arg5: memref<1x128xf32, #tpu.memory_space<vmem>>, %arg6: memref<16x128xf32, #tpu.memory_space<vmem>>) attributes {dimension_semantics = [#tpu.dimension_semantics<parallel>], iteration_bounds = array<i64: 1>, scalar_prefetch = 0 : i64, scratch_operands = 0 : i64, tpu.core_type = #tpu.core_type<tc>, window_params = [{transform_indices = @transform_0, window_bounds = array<i64: 16, 32>}, {pipeline_mode = #tpu.pipeline_mode<synchronous>, transform_indices = @transform_1, window_bounds = array<i64: 32, 128>}, {pipeline_mode = #tpu.pipeline_mode<synchronous>, transform_indices = @transform_2, window_bounds = array<i64: 1, 128>}, {pipeline_mode = #tpu.pipeline_mode<synchronous>, transform_indices = @transform_3, window_bounds = array<i64: 128, 128>}, {pipeline_mode = #tpu.pipeline_mode<synchronous>, transform_indices = @transform_4, window_bounds = array<i64: 1, 128>}, {transform_indices = @transform_5, window_bounds = array<i64: 16, 128>}]} {
    %c0 = arith.constant 0 : index
    %c0_0 = arith.constant 0 : index
    %0 = vector.load %arg1[%c0, %c0_0] : memref<16x32xbf16, #tpu.memory_space<vmem>>, vector<16x32xbf16>
    %c0_1 = arith.constant 0 : index
    %c0_2 = arith.constant 0 : index
    %1 = vector.load %arg2[%c0_1, %c0_2] : memref<32x128xbf16, #tpu.memory_space<vmem>>, vector<32x128xbf16>
    %cst = arith.constant dense<0.000000e+00> : vector<16x128xf32>
    %2 = tpu.matmul %0, %1, %cst {dimension_numbers = #tpu.dot_dimension_numbers<[1], [0], [0], [1], [0, 0, 1, 1], [], []>} : vector<16x32xbf16>, vector<32x128xbf16>, vector<16x128xf32> -> vector<16x128xf32>
    %c0_3 = arith.constant 0 : index
    %c0_4 = arith.constant 0 : index
    %3 = vector.load %arg3[%c0_3, %c0_4] : memref<1x128xf32, #tpu.memory_space<vmem>>, vector<1x128xf32>
    %4 = vector.broadcast %3 : vector<1x128xf32> to vector<16x128xf32>
    %5 = arith.addf %2, %4 : vector<16x128xf32>
    %cst_5 = arith.constant 0.000000e+00 : f32
    %6 = vector.broadcast %cst_5 : f32 to vector<16x128xf32>
    %7 = arith.maximumf %5, %6 : vector<16x128xf32>
    %8 = arith.truncf %7 : vector<16x128xf32> to vector<16x128xbf16>
    %c0_6 = arith.constant 0 : index
    %c0_7 = arith.constant 0 : index
    %9 = vector.load %arg4[%c0_6, %c0_7] : memref<128x128xbf16, #tpu.memory_space<vmem>>, vector<128x128xbf16>
    %cst_8 = arith.constant dense<0.000000e+00> : vector<16x128xf32>
    %10 = tpu.matmul %8, %9, %cst_8 {dimension_numbers = #tpu.dot_dimension_numbers<[1], [0], [0], [1], [0, 0, 1, 1], [], []>} : vector<16x128xbf16>, vector<128x128xbf16>, vector<16x128xf32> -> vector<16x128xf32>
    %c0_9 = arith.constant 0 : index
    %c0_10 = arith.constant 0 : index
    %11 = vector.load %arg5[%c0_9, %c0_10] : memref<1x128xf32, #tpu.memory_space<vmem>>, vector<1x128xf32>
    %12 = vector.broadcast %11 : vector<1x128xf32> to vector<16x128xf32>
    %13 = arith.addf %10, %12 : vector<16x128xf32>
    %c0_11 = arith.constant 0 : index
    %c0_12 = arith.constant 0 : index
    %14 = vector.load %arg6[%c0_11, %c0_12] : memref<16x128xf32, #tpu.memory_space<vmem>>, vector<16x128xf32>
    tpu.vector_store %arg6[%c0_11, %c0_12], %13 {strides = array<i32>} : memref<16x128xf32, #tpu.memory_space<vmem>>, vector<16x128xf32>,
    return
  }
  func.func @transform_0(%arg0: i32) -> (i32, i32) {
    %c0_i32 = arith.constant 0 : i32
    %c0_i32_0 = arith.constant 0 : i32
    return %arg0, %c0_i32 : i32, i32
  }
  func.func @transform_1(%arg0: i32) -> (i32, i32) {
    %c0_i32 = arith.constant 0 : i32
    %c0_i32_0 = arith.constant 0 : i32
    %c0_i32_1 = arith.constant 0 : i32
    return %c0_i32, %c0_i32_0 : i32, i32
  }
  func.func @transform_2(%arg0: i32) -> (i32, i32) {
    %c0_i32 = arith.constant 0 : i32
    %c0_i32_0 = arith.constant 0 : i32
    %c0_i32_1 = arith.constant 0 : i32
    return %c0_i32, %c0_i32_0 : i32, i32
  }
  func.func @transform_3(%arg0: i32) -> (i32, i32) {
    %c0_i32 = arith.constant 0 : i32
    %c0_i32_0 = arith.constant 0 : i32
    %c0_i32_1 = arith.constant 0 : i32
    return %c0_i32, %c0_i32_0 : i32, i32
  }
  func.func @transform_4(%arg0: i32) -> (i32, i32) {
    %c0_i32 = arith.constant 0 : i32
    %c0_i32_0 = arith.constant 0 : i32
    %c0_i32_1 = arith.constant 0 : i32
    return %c0_i32, %c0_i32_0 : i32, i32
  }
  func.func @transform_5(%arg0: i32) -> (i32, i32) {
    %c0_i32 = arith.constant 0 : i32
    %c0_i32_0 = arith.constant 0 : i32
    return %arg0, %c0_i32 : i32, i32
  }
}

module attributes {stable_mosaic.version = 11 : i64} {
  func.func @mlp_kernel(%arg0: i32, %arg1: memref<16x32xbf16, #tpu.memory_space<vmem>>, %arg2: memref<32x128xbf16, #tpu.memory_space<vmem>>, %arg3: memref<1x128xf32, #tpu.memory_space<vmem>>, %arg4: memref<128x128xbf16, #tpu.memory_space<vmem>>, %arg5: memref<1x128xf32, #tpu.memory_space<vmem>>, %arg6: memref<16x128xf32, #tpu.memory_space<vmem>>) attributes {dimension_semantics = [#tpu.dimension_semantics<parallel>], iteration_bounds = array<i64: 1>, scalar_prefetch = 0 : i64, scratch_operands = 0 : i64, tpu.core_type = #tpu.core_type<tc>, window_params = [{transform_indices = @transform_0, window_bounds = array<i64: 16, 32>}, {pipeline_mode = #tpu.pipeline_mode<synchronous>, transform_indices = @transform_1, window_bounds = array<i64: 32, 128>}, {pipeline_mode = #tpu.pipeline_mode<synchronous>, transform_indices = @transform_2, window_bounds = array<i64: 1, 128>}, {pipeline_mode = #tpu.pipeline_mode<synchronous>, transform_indices = @transform_3, window_bounds = array<i64: 128, 128>}, {pipeline_mode = #tpu.pipeline_mode<synchronous>, transform_indices = @transform_4, window_bounds = array<i64: 1, 128>}, {transform_indices = @transform_5, window_bounds = array<i64: 16, 128>}]} {
    %c0 = arith.constant 0 : index
    %c0_0 = arith.constant 0 : index
    %0 = vector.load %arg1[%c0, %c0_0] : memref<16x32xbf16, #tpu.memory_space<vmem>>, vector<16x32xbf16>
    %c0_1 = arith.constant 0 : index
    %c0_2 = arith.constant 0 : index
    %1 = vector.load %arg2[%c0_1, %c0_2] : memref<32x128xbf16, #tpu.memory_space<vmem>>, vector<32x128xbf16>
    %cst = arith.constant dense<0.000000e+00> : vector<16x128xf32>
    %2 = tpu.matmul %0, %1, %cst {dimension_numbers = #tpu.dot_dimension_numbers<[1], [0], [0], [1], [0, 0, 1, 1], [], []>} : vector<16x32xbf16>, vector<32x128xbf16>, vector<16x128xf32> -> vector<16x128xf32>
    %c0_3 = arith.constant 0 : index
    %c0_4 = arith.constant 0 : index
    %3 = vector.load %arg3[%c0_3, %c0_4] : memref<1x128xf32, #tpu.memory_space<vmem>>, vector<1x128xf32>
    %4 = vector.broadcast %3 : vector<1x128xf32> to vector<16x128xf32>
    %5 = arith.addf %2, %4 : vector<16x128xf32>
    %cst_5 = arith.constant 0.000000e+00 : f32
    %6 = vector.broadcast %cst_5 : f32 to vector<16x128xf32>
    %7 = arith.maximumf %5, %6 : vector<16x128xf32>
    %8 = arith.truncf %7 : vector<16x128xf32> to vector<16x128xbf16>
    %c0_6 = arith.constant 0 : index
    %c0_7 = arith.constant 0 : index
    %9 = vector.load %arg4[%c0_6, %c0_7] : memref<128x128xbf16, #tpu.memory_space<vmem>>, vector<128x128xbf16>
    %cst_8 = arith.constant dense<0.000000e+00> : vector<16x128xf32>
    %10 = tpu.matmul %8, %9, %cst_8 {dimension_numbers = #tpu.dot_dimension_numbers<[1], [0], [0], [1], [0, 0, 1, 1], [], []>} : vector<16x128xbf16>, vector<128x128xbf16>, vector<16x128xf32> -> vector<16x128xf32>
    %c0_9 = arith.constant 0 : index
    %c0_10 = arith.constant 0 : index
    %11 = vector.load %arg5[%c0_9, %c0_10] : memref<1x128xf32, #tpu.memory_space<vmem>>, vector<1x128xf32>
    %12 = vector.broadcast %11 : vector<1x128xf32> to vector<16x128xf32>
    %13 = arith.addf %10, %12 : vector<16x128xf32>
    %c0_11 = arith.constant 0 : index
    %c0_12 = arith.constant 0 : index
    %14 = vector.load %arg6[%c0_11, %c0_12] : memref<16x128xf32, #tpu.memory_space<vmem>>, vector<16x128xf32>
    tpu.vector_store %arg6[%c0_11, %c0_12], %13 {strides = array<i32>} : memref<16x128xf32, #tpu.memory_space<vmem>>, vector<16x128xf32>,
    return
  }
  func.func @transform_0(%arg0: i32) -> (i32, i32) {
    %c0_i32 = arith.constant 0 : i32
    %c0_i32_0 = arith.constant 0 : i32
    return %arg0, %c0_i32 : i32, i32
  }
  func.func @transform_1(%arg0: i32) -> (i32, i32) {
    %c0_i32 = arith.constant 0 : i32
    %c0_i32_0 = arith.constant 0 : i32
    %c0_i32_1 = arith.constant 0 : i32
    return %c0_i32, %c0_i32_0 : i32, i32
  }
  func.func @transform_2(%arg0: i32) -> (i32, i32) {
    %c0_i32 = arith.constant 0 : i32
    %c0_i32_0 = arith.constant 0 : i32
    %c0_i32_1 = arith.constant 0 : i32
    return %c0_i32, %c0_i32_0 : i32, i32
  }
  func.func @transform_3(%arg0: i32) -> (i32, i32) {
    %c0_i32 = arith.constant 0 : i32
    %c0_i32_0 = arith.constant 0 : i32
    %c0_i32_1 = arith.constant 0 : i32
    return %c0_i32, %c0_i32_0 : i32, i32
  }
  func.func @transform_4(%arg0: i32) -> (i32, i32) {
    %c0_i32 = arith.constant 0 : i32
    %c0_i32_0 = arith.constant 0 : i32
    %c0_i32_1 = arith.constant 0 : i32
    return %c0_i32, %c0_i32_0 : i32, i32
  }
  func.func @transform_5(%arg0: i32) -> (i32, i32) {
    %c0_i32 = arith.constant 0 : i32
    %c0_i32_0 = arith.constant 0 : i32
    return %arg0, %c0_i32 : i32, i32
  }
}

</mosaic_0001>

<bundles_post_ra>
// kernel: fwd.1
= control target key start
LH: loop header
LB: loop body
LE: loop exit
PB: predicated region body
PF: predicated region fallthrough
CT: control target
= control target key end

     0   :  { %10 = vsyncpa [#allocation3], 0  ;;  %s326_s18 = smov [#allocation2]   ;;  %s394_s0 = inlined_call_operand.vmem [shape: bf16[16,32], index: 0, kind: input, shape index: {}]   ;;  %s395_s1 = inlined_call_operand.vmem [shape: bf16[32,128], index: 1, kind: input, shape index: {}]   ;;  %s396_s2 = inlined_call_operand.vmem [shape: f32[1,128], index: 2, kind: input, shape index: {}]   ;;  %s397_s3 = inlined_call_operand.hbm [shape: bf16[128,128], index: 3, kind: input, shape index: {}]   ;;  %s398_s4 = inlined_call_operand.vmem [shape: f32[1,128], index: 4, kind: input, shape index: {}]   ;;  %s399_s5 = inlined_call_operand.vmem [shape: f32[16,128], index: 5, kind: output, shape index: {}]  }
   0x1   :  { %s22_s19 = sshll.u32 %s326_s18, 4  ;;  %s302_s22 = scalar_lea.hbm %s397_s3, 1024  ;;  %s23_s19 = int_to_ptr.vmem [resolvable:$true] %s22_s19 }
   0x2   :  { %p303_p0 = scmp.ne.s32.totalorder %s397_s3, %s302_s22  ;;  %p306_p1 = scmp.lt.u32.totalorder %s302_s22, %s397_s3 }
   0x4   :  { %p308_p2 = pnand %p306_p1, %p303_p0 }
   0x6   :  { %311 = shalt.err (!%p308_p2)
}
   0x7   :  { %s312_s27 = scalar_lea.vmem %s23_s19, 1024  ;;  %p317_p4 = scmp.lt.s32.totalorder %s23_s19, %s23_s19 }
   0x8   :  { %p313_p3 = scmp.ne.s32.totalorder %s23_s19, %s312_s27  ;;  %p318_p5 = scmp.lt.s32.totalorder %s312_s27, %s312_s27 }
   0xa   :  { %p319_p6 = por %p318_p5, %p317_p4 }
   0xc   :  { %p320_p7 = pnand %p319_p6, %p313_p3 }
   0xe   :  { %323 = shalt.err (!%p320_p7)
}
   0xf   :  { %s327_s28 = smov 64   ;;  %s328_s29 = smov 4  }
  0x10   :  { %28 = dma.hbm_to_vmem [thread:$0]  %s397_s3, 1024, %s23_s19, [#allocation3], %s327_s28, %s327_s28, %s328_s29  }
  0x11   :  { %324 = dma.done.wait [#allocation3], 1024  }
  0x12   :  { %325 = vsyncadd [#allocation3], 4294966272  ;;  %v329_v0 = vmov 0.0   ;;  %vm330_vm0 = vmmov 0   ;;  %v291_v1 = vld [vmem:[%s395_s1] sm:$0xff]   ;;  %v292_v2 = vld [vmem:[%s395_s1 + $0x8] sm:$0xff]  }
  0x13   :  { %258 = vmatprep.subr.bf16.mxu0 %v329_v0  ;;  %262 = vmatprep.mubr.msk.bf16.mxu0 %vm330_vm0, %v329_v0  ;;  %v294_v3 = vld [vmem:[#allocation2] sm:$0xff]   ;;  %v295_v5 = vld [vmem:[#allocation2 + $0x8] sm:$0xff]   ;;  %vm65_vm1 = vcmask 261120   ;;  %v296_v6 = vld [vmem:[#allocation2 + $0x10] sm:$0xff]  }
  0x14   :  { %266 = vmatprep.subr.bf16.mxu1 %v329_v0  ;;  %282 = vmatprep.mubr.msk.bf16.mxu1 %vm330_vm0, %v329_v0  ;;  %v293_v4 = vld [vmem:[%s394_s0] sm:$0xff]   ;;  %v297_v7 = vld [vmem:[#allocation2 + $0x18] sm:$0xff]   ;;  %v299_v9 = vld [vmem:[#allocation2 + $0x28] sm:$0xff]  }
  0x15   :  { %259 = vmatpush3.bf16.msra.mxu0 %v291_v1  ;;  %267 = vmatpush3.bf16.msra.mxu1 %v294_v3  ;;  %v298_v8 = vld [vmem:[#allocation2 + $0x20] sm:$0xff]   ;;  %v300_v10 = vld [vmem:[#allocation2 + $0x30] sm:$0xff]   ;;  %v301_v11 = vld [vmem:[#allocation2 + $0x38] sm:$0xff]  }
  0x16   :  { %260 = vmatprep.subr.bf16.mxu0 %v329_v0  ;;  %268 = vmatprep.subr.bf16.mxu1 %v329_v0  ;;  %v232_v12 = vld [vmem:[%s396_s2] ss:$0 sm:$0xff] }
  0x17   :  { %v237_v22 = vld [vmem:[%s398_s4] ss:$0 sm:$0xff] }
  0x19   :  { %261 = vmatpush3.bf16.msra.mxu0 %v292_v2  ;;  %269 = vmatpush3.bf16.msra.mxu1 %v295_v5 }
  0x1a   :  { %270 = vmatprep.subr.bf16.mxu1 %v329_v0 }
  0x1c   :  { %263 = vmatmul.mubr.msk.bf16.vlgmr.msra.gmra.mrb[0].mxu0 %vm65_vm1, %v293_v4 }
  0x1d   :  { %271 = vmatpush3.bf16.msra.mxu1 %v296_v6 }
  0x1e   :  { %272 = vmatprep.subr.bf16.mxu1 %v329_v0 }
  0x21   :  { %273 = vmatpush3.bf16.msra.mxu1 %v297_v7 }
  0x22   :  { %274 = vmatprep.subr.bf16.mxu1 %v329_v0 }
  0x25   :  { %275 = vmatpush3.bf16.msra.mxu1 %v298_v8 }
  0x26   :  { %276 = vmatprep.subr.bf16.mxu1 %v329_v0 }
  0x29   :  { %277 = vmatpush3.bf16.msra.mxu1 %v299_v9 }
  0x2a   :  { %278 = vmatprep.subr.bf16.mxu1 %v329_v0 }
  0x2d   :  { %279 = vmatpush3.bf16.msra.mxu1 %v300_v10 }
  0x2e   :  { %280 = vmatprep.subr.bf16.mxu1 %v329_v0 }
  0x31   :  { %281 = vmatpush3.bf16.msra.mxu1 %v301_v11 }
  0xef   :  { %v103_v13 = vpop.f32.mrb[0].mxu0 }
  0xf0   :  { %v104_v14 = vadd.f32 %v232_v12, %v103_v13  ;;  %v264_v15 = vpop.f32.mrb[1].mxu0 }
  0xf1   :  { %v106_v16 = vpop.f32.mrb[2].mxu0 }
  0xf2   :  { %v107_v17 = vadd.f32 %v232_v12, %v106_v16  ;;  %v265_v18 = vpop.f32.mrb[3].mxu0  ;;  %v110_v19 = vmax.f32 %v104_v14, 0.0 }
  0xf4   :  { %v111_v20 = vmax.f32 %v107_v17, 0.0 }
  0xf6   :  { %v112_v21 = vpack.c.bf16 %v111_v20, %v110_v19 }
  0xf8   :  { %283 = vmatmul.mubr.bf16.vlgmr.msra.gmra.mrb[0].mxu1 %v112_v21 }
 0x1cb   :  { %v218_v23 = vpop.f32.mrb[0].mxu1 }
 0x1cc   :  { %v219_v24 = vadd.f32 %v237_v22, %v218_v23  ;;  %v284_v25 = vpop.f32.mrb[1].mxu1 }
 0x1cd   :  { %v221_v26 = vpop.f32.mrb[2].mxu1 }
 0x1ce   :  { %225 = vst [vmem:[%s399_s5] sm:$0xff] %v219_v24  ;;  %v222_v27 = vadd.f32 %v237_v22, %v221_v26  ;;  %v285_v28 = vpop.f32.mrb[3].mxu1 }
 0x1d0   :  { %226 = vst [vmem:[%s399_s5 + $0x8] sm:$0xff] %v222_v27 }
 0x1d1   :  { %231 = vsyncpa [#allocation3], 1 }

// kernel: fwd.1
= control target key start
LH: loop header
LB: loop body
LE: loop exit
PB: predicated region body
PF: predicated region fallthrough
CT: control target
= control target key end

     0   :  { %10 = vsyncpa [#allocation3], 0  ;;  %s326_s18 = smov [#allocation2]   ;;  %s394_s0 = inlined_call_operand.vmem [shape: bf16[16,32], index: 0, kind: input, shape index: {}]   ;;  %s395_s1 = inlined_call_operand.vmem [shape: bf16[32,128], index: 1, kind: input, shape index: {}]   ;;  %s396_s2 = inlined_call_operand.vmem [shape: f32[1,128], index: 2, kind: input, shape index: {}]   ;;  %s397_s3 = inlined_call_operand.hbm [shape: bf16[128,128], index: 3, kind: input, shape index: {}]   ;;  %s398_s4 = inlined_call_operand.vmem [shape: f32[1,128], index: 4, kind: input, shape index: {}]   ;;  %s399_s5 = inlined_call_operand.vmem [shape: f32[16,128], index: 5, kind: output, shape index: {}]  }
   0x1   :  { %s22_s19 = sshll.u32 %s326_s18, 4  ;;  %s302_s22 = scalar_lea.hbm %s397_s3, 1024  ;;  %s23_s19 = int_to_ptr.vmem [resolvable:$true] %s22_s19 }
   0x2   :  { %p303_p0 = scmp.ne.s32.totalorder %s397_s3, %s302_s22  ;;  %p306_p1 = scmp.lt.u32.totalorder %s302_s22, %s397_s3 }
   0x4   :  { %p308_p2 = pnand %p306_p1, %p303_p0 }
   0x6   :  { %311 = shalt.err (!%p308_p2)
}
   0x7   :  { %s312_s27 = scalar_lea.vmem %s23_s19, 1024  ;;  %p317_p4 = scmp.lt.s32.totalorder %s23_s19, %s23_s19 }
   0x8   :  { %p313_p3 = scmp.ne.s32.totalorder %s23_s19, %s312_s27  ;;  %p318_p5 = scmp.lt.s32.totalorder %s312_s27, %s312_s27 }
   0xa   :  { %p319_p6 = por %p318_p5, %p317_p4 }
   0xc   :  { %p320_p7 = pnand %p319_p6, %p313_p3 }
   0xe   :  { %323 = shalt.err (!%p320_p7)
}
   0xf   :  { %s327_s28 = smov 64   ;;  %s328_s29 = smov 4  }
  0x10   :  { %28 = dma.hbm_to_vmem [thread:$0]  %s397_s3, 1024, %s23_s19, [#allocation3], %s327_s28, %s327_s28, %s328_s29  }
  0x11   :  { %324 = dma.done.wait [#allocation3], 1024  }
  0x12   :  { %325 = vsyncadd [#allocation3], 4294966272  ;;  %v329_v0 = vmov 0.0   ;;  %vm330_vm0 = vmmov 0   ;;  %v291_v1 = vld [vmem:[%s395_s1] sm:$0xff]   ;;  %v292_v2 = vld [vmem:[%s395_s1 + $0x8] sm:$0xff]  }
  0x13   :  { %258 = vmatprep.subr.bf16.mxu0 %v329_v0  ;;  %262 = vmatprep.mubr.msk.bf16.mxu0 %vm330_vm0, %v329_v0  ;;  %v294_v3 = vld [vmem:[#allocation2] sm:$0xff]   ;;  %v295_v5 = vld [vmem:[#allocation2 + $0x8] sm:$0xff]   ;;  %vm65_vm1 = vcmask 261120   ;;  %v296_v6 = vld [vmem:[#allocation2 + $0x10] sm:$0xff]  }
  0x14   :  { %266 = vmatprep.subr.bf16.mxu1 %v329_v0  ;;  %282 = vmatprep.mubr.msk.bf16.mxu1 %vm330_vm0, %v329_v0  ;;  %v293_v4 = vld [vmem:[%s394_s0] sm:$0xff]   ;;  %v297_v7 = vld [vmem:[#allocation2 + $0x18] sm:$0xff]   ;;  %v299_v9 = vld [vmem:[#allocation2 + $0x28] sm:$0xff]  }
  0x15   :  { %259 = vmatpush3.bf16.msra.mxu0 %v291_v1  ;;  %267 = vmatpush3.bf16.msra.mxu1 %v294_v3  ;;  %v298_v8 = vld [vmem:[#allocation2 + $0x20] sm:$0xff]   ;;  %v300_v10 = vld [vmem:[#allocation2 + $0x30] sm:$0xff]   ;;  %v301_v11 = vld [vmem:[#allocation2 + $0x38] sm:$0xff]  }
  0x16   :  { %260 = vmatprep.subr.bf16.mxu0 %v329_v0  ;;  %268 = vmatprep.subr.bf16.mxu1 %v329_v0  ;;  %v232_v12 = vld [vmem:[%s396_s2] ss:$0 sm:$0xff] }
  0x17   :  { %v237_v22 = vld [vmem:[%s398_s4] ss:$0 sm:$0xff] }
  0x19   :  { %261 = vmatpush3.bf16.msra.mxu0 %v292_v2  ;;  %269 = vmatpush3.bf16.msra.mxu1 %v295_v5 }
  0x1a   :  { %270 = vmatprep.subr.bf16.mxu1 %v329_v0 }
  0x1c   :  { %263 = vmatmul.mubr.msk.bf16.vlgmr.msra.gmra.mrb[0].mxu0 %vm65_vm1, %v293_v4 }
  0x1d   :  { %271 = vmatpush3.bf16.msra.mxu1 %v296_v6 }
  0x1e   :  { %272 = vmatprep.subr.bf16.mxu1 %v329_v0 }
  0x21   :  { %273 = vmatpush3.bf16.msra.mxu1 %v297_v7 }
  0x22   :  { %274 = vmatprep.subr.bf16.mxu1 %v329_v0 }
  0x25   :  { %275 = vmatpush3.bf16.msra.mxu1 %v298_v8 }
  0x26   :  { %276 = vmatprep.subr.bf16.mxu1 %v329_v0 }
  0x29   :  { %277 = vmatpush3.bf16.msra.mxu1 %v299_v9 }
  0x2a   :  { %278 = vmatprep.subr.bf16.mxu1 %v329_v0 }
  0x2d   :  { %279 = vmatpush3.bf16.msra.mxu1 %v300_v10 }
  0x2e   :  { %280 = vmatprep.subr.bf16.mxu1 %v329_v0 }
  0x31   :  { %281 = vmatpush3.bf16.msra.mxu1 %v301_v11 }
  0xef   :  { %v103_v13 = vpop.f32.mrb[0].mxu0 }
  0xf0   :  { %v104_v14 = vadd.f32 %v232_v12, %v103_v13  ;;  %v264_v15 = vpop.f32.mrb[1].mxu0 }
  0xf1   :  { %v106_v16 = vpop.f32.mrb[2].mxu0 }
  0xf2   :  { %v107_v17 = vadd.f32 %v232_v12, %v106_v16  ;;  %v265_v18 = vpop.f32.mrb[3].mxu0  ;;  %v110_v19 = vmax.f32 %v104_v14, 0.0 }
  0xf4   :  { %v111_v20 = vmax.f32 %v107_v17, 0.0 }
  0xf6   :  { %v112_v21 = vpack.c.bf16 %v111_v20, %v110_v19 }
  0xf8   :  { %283 = vmatmul.mubr.bf16.vlgmr.msra.gmra.mrb[0].mxu1 %v112_v21 }
 0x1cb   :  { %v218_v23 = vpop.f32.mrb[0].mxu1 }
 0x1cc   :  { %v219_v24 = vadd.f32 %v237_v22, %v218_v23  ;;  %v284_v25 = vpop.f32.mrb[1].mxu1 }
 0x1cd   :  { %v221_v26 = vpop.f32.mrb[2].mxu1 }
 0x1ce   :  { %225 = vst [vmem:[%s399_s5] sm:$0xff] %v219_v24  ;;  %v222_v27 = vadd.f32 %v237_v22, %v221_v26  ;;  %v285_v28 = vpop.f32.mrb[3].mxu1 }
 0x1d0   :  { %226 = vst [vmem:[%s399_s5 + $0x8] sm:$0xff] %v222_v27 }
 0x1d1   :  { %231 = vsyncpa [#allocation3], 1 }

</bundles_post_ra>
